<compile_context>
chip_gen: v5e
topology: v5e:2x2
jax: 0.10.0
libtpu: 0.0.40
codegen_flags: <defaults>
</compile_context>

<pallas_src>
import numpy as np
import jax
import jax.numpy as jnp
from jax import lax
from jax.experimental import pallas as pl
from jax.experimental.pallas import tpu as pltpu


# ------------------------- fused bidirectional LSTM layer ------------------------

def _bilstm_layer_kernel(gates_ref, whh_ref, out_ref, cN_ref, h_sc, c_sc):
    """grid = (2 directions [parallel], num_time_chunks [arbitrary]).

    gates_ref: (Tc, B, 4H) f32   precomputed x@W_ih + b for this direction/chunk
    whh_ref:   (H, 4H)    bf16   recurrent weight for this direction
    out_ref:   (Tc, B, H) f32    hidden states (written at ORIGINAL time positions)
    cN_ref:    (B, H)     f32    final cell state (written on the last chunk)
    h_sc/c_sc: (B, H)     f32    VMEM-resident recurrent state
    """
    d = pl.program_id(0)          # 0 = forward, 1 = backward
    chunk = pl.program_id(1)
    n_chunks = pl.num_programs(1)

    @pl.when(chunk == 0)
    def _():
        h_sc[...] = jnp.zeros_like(h_sc)
        c_sc[...] = jnp.zeros_like(c_sc)

    whh = whh_ref[...]            # (H, 4H) bf16, resident across the whole grid
    Tc = gates_ref.shape[0]
    H = h_sc.shape[-1]

    def step(s, carry):
        # forward walks local 0..Tc-1, backward walks Tc-1..0 within the chunk
        t = s + d * (Tc - 1 - 2 * s)
        g_pre = gates_ref[t]                               # (B, 4H) f32
        gates = g_pre + jnp.dot(h_sc[...].astype(whh.dtype), whh,
                                preferred_element_type=jnp.float32)
        i = jax.nn.sigmoid(gates[:, 0:H])
        f = jax.nn.sigmoid(gates[:, H:2 * H])
        g = jnp.tanh(gates[:, 2 * H:3 * H])
        o = jax.nn.sigmoid(gates[:, 3 * H:4 * H])
        c_new = f * c_sc[...] + i * g                      # f32 state update
        h_new = o * jnp.tanh(c_new)
        c_sc[...] = c_new
        h_sc[...] = h_new
        out_ref[t] = h_new.astype(out_ref.dtype)           # stored at original time
        return carry

    lax.fori_loop(0, Tc, step, 0, unroll=True)

    @pl.when(chunk == n_chunks - 1)
    def _():
        cN_ref[...] = c_sc[...].astype(cN_ref.dtype)


def bilstm_layer(x_tbd, wih_stack, whh_stack, bias_stack, time_chunk=16):
    """x_tbd: (T, B, Din).  wih_stack: (2, Din, 4H), whh_stack: (2, H, 4H),
    bias_stack: (2, 4H) (b_ih + b_hh fused).
    Returns out (2, T, B, H) hidden states at original time positions, and
    cN (2, B, H) final cell states."""
    T, B, Din = x_tbd.shape
    H = whh_stack.shape[1]

    # pick a time-chunk size that divides T
    Tc = min(time_chunk, T)
    while T % Tc:
        Tc -= 1
    NC = T // Tc

    # Hoisted, non-recurrent input projection for BOTH directions, bias folded in.
    # bf16 operands, f32 accumulation (MXU-efficient on all generations).
    gates_pre = jnp.einsum(
        "tbd,zdg->ztbg",
        x_tbd.astype(jnp.bfloat16), wih_stack.astype(jnp.bfloat16),
        preferred_element_type=jnp.float32) + bias_stack[:, None, None, :]
    # (2, T, B, 4H) f32

    whh_bf16 = whh_stack.astype(jnp.bfloat16)

    def chunk_idx(d, c):
        # forward consumes chunks left->right, backward right->left (free reversal
        # via the index_map; no HBM [::-1] copies)
        return c + d * (NC - 1 - 2 * c)

    out, cN = pl.pallas_call(
        _bilstm_layer_kernel,
        out_shape=(jax.ShapeDtypeStruct((2, T, B, H), jnp.float32),
                   jax.ShapeDtypeStruct((2, B, H), jnp.float32)),
        grid_spec=pltpu.PrefetchScalarGridSpec(
            num_scalar_prefetch=0,
            grid=(2, NC),
            in_specs=[
                pl.BlockSpec((None, Tc, B, 4 * H),
                             lambda d, c: (d, chunk_idx(d, c), 0, 0)),
                pl.BlockSpec((None, H, 4 * H), lambda d, c: (d, 0, 0)),
            ],
            out_specs=[
                pl.BlockSpec((None, Tc, B, H),
                             lambda d, c: (d, chunk_idx(d, c), 0, 0)),
                pl.BlockSpec((None, B, H), lambda d, c: (d, 0, 0)),
            ],
            scratch_shapes=[pltpu.VMEM((B, H), jnp.float32),
                            pltpu.VMEM((B, H), jnp.float32)]),
        compiler_params=pltpu.CompilerParams(
            # direction axis is independent -> shard across TCs on v7x;
            # time-chunk axis is the sequential recurrence.
            dimension_semantics=("parallel", "arbitrary")),
    )(gates_pre, whh_bf16)
    return out, cN


# ------------------------------- LayerNorm kernel --------------------------------
# The reference forward computes dropout+layer_norm but feeds the *embedding* to the
# LSTM, so this result is discarded.  Kept available (off by default) for fidelity.

def _layer_norm_kernel(x_ref, g_ref, b_ref, o_ref):
    x = x_ref[...]
    mean = jnp.mean(x, axis=-1, keepdims=True)
    var = jnp.mean((x - mean) ** 2, axis=-1, keepdims=True)
    inv = lax.rsqrt(var + 1e-5)
    o_ref[...] = (x - mean) * inv * g_ref[...] + b_ref[...]


def layer_norm(x_nd, gamma, beta):
    N, D = x_nd.shape
    return pl.pallas_call(
        _layer_norm_kernel,
        out_shape=jax.ShapeDtypeStruct((N, D), jnp.float32),
        in_specs=[pl.BlockSpec((N, D), lambda: (0, 0)),
                  pl.BlockSpec((1, D), lambda: (0, 0)),
                  pl.BlockSpec((1, D), lambda: (0, 0))],
        out_specs=pl.BlockSpec((N, D), lambda: (0, 0)),
    )(x_nd, gamma.reshape(1, D), beta.reshape(1, D))


# ------------------------------- Encoder forward ----------------------------------

def lstm_encoder_forward(token_ids, params, layers_num, time_chunk=16,
                         compute_discarded_layer_norm=False):
    """Reproduces LSTMEncoder.forward (eval mode).  token_ids: (B, T) int32."""
    emb_table = params["embedding"]
    question_embedding = jnp.take(emb_table, token_ids, axis=0)   # (B, T, D)
    B, T, D = question_embedding.shape

    if compute_discarded_layer_norm:
        # dropout (eval -> identity) + layer_norm; result unused, as in the reference.
        _ = layer_norm(question_embedding.reshape(B * T, D),
                       params["ln_gamma"], params["ln_beta"])

    x = jnp.transpose(question_embedding, (1, 0, 2))              # (T, B, D)
    h_list, c_list = [], []
    layer_in = x
    for l in range(layers_num):
        lp = params["lstm"][l]
        out2, cN = bilstm_layer(layer_in, lp["wih"], lp["whh"], lp["bias"],
                                time_chunk=time_chunk)
        # final hidden states: fwd = out at t=T-1, bwd = out at t=0
        h_list += [out2[0, T - 1], out2[1, 0]]
        c_list += [cN[0], cN[1]]
        layer_in = jnp.concatenate([out2[0], out2[1]], axis=-1)   # (T, B, 2H)

    question_hidden = jnp.transpose(layer_in, (1, 0, 2))          # (B, T, 2H)
    h = jnp.stack(h_list, axis=0)                                 # (2*layers, B, H)
    c = jnp.stack(c_list, axis=0)
    h = h[:layers_num] + h[layers_num:]
    c = c[:layers_num] + c[layers_num:]
    return question_hidden, (h, c)


# ----------------------- pure-JAX reference (same numerics) ----------------------

def _ref_lstm_direction(x_tbd, wih, whh, b, reverse):
    T, B, Din = x_tbd.shape
    H = whh.shape[0]
    wih_b = wih.astype(jnp.bfloat16)
    whh_b = whh.astype(jnp.bfloat16)

    def step(carry, x_t):
        h, c = carry
        gates = (jnp.dot(x_t.astype(jnp.bfloat16), wih_b,
                         preferred_element_type=jnp.float32)
                 + jnp.dot(h.astype(jnp.bfloat16), whh_b,
                           preferred_element_type=jnp.float32) + b)
        i = jax.nn.sigmoid(gates[:, :H])
        f = jax.nn.sigmoid(gates[:, H:2 * H])
        g = jnp.tanh(gates[:, 2 * H:3 * H])
        o = jax.nn.sigmoid(gates[:, 3 * H:])
        c = f * c + i * g
        h = o * jnp.tanh(c)
        return (h, c), h

    init = (jnp.zeros((B, H), jnp.float32), jnp.zeros((B, H), jnp.float32))
    xs = x_tbd[::-1] if reverse else x_tbd
    (hN, cN), ys = lax.scan(step, init, xs)
    if reverse:
        ys = ys[::-1]
    return ys, hN, cN


def ref_encoder_forward(token_ids, params, layers_num):
    x = jnp.transpose(jnp.take(params["embedding"], token_ids, axis=0), (1, 0, 2))
    h_list, c_list = [], []
    for l in range(layers_num):
        lp = params["lstm"][l]
        of, hf, cf = _ref_lstm_direction(x, lp["wih"][0], lp["whh"][0], lp["bias"][0], False)
        ob, hb, cb = _ref_lstm_direction(x, lp["wih"][1], lp["whh"][1], lp["bias"][1], True)
        h_list += [hf, hb]
        c_list += [cf, cb]
        x = jnp.concatenate([of, ob], axis=-1)
    qh = jnp.transpose(x, (1, 0, 2))
    h = jnp.stack(h_list, axis=0)
    c = jnp.stack(c_list, axis=0)
    return qh, (h[:layers_num] + h[layers_num:], c[:layers_num] + c[layers_num:])


# ------------------------------ Deterministic init --------------------------------

def init_params(key, word_num, d_model, layers_num):
    keys = iter(jax.random.split(key, 1 + layers_num * 2 * 4))
    k = 1.0 / float(np.sqrt(d_model))

    def u(shape):
        return jax.random.uniform(next(keys), shape, jnp.float32, -k, k)

    params = {
        "embedding": jax.random.normal(next(keys), (word_num, d_model), jnp.float32),
        "ln_gamma": jnp.ones((d_model,), jnp.float32),
        "ln_beta": jnp.zeros((d_model,), jnp.float32),
        "lstm": [],
    }
    for l in range(layers_num):
        d_in = d_model if l == 0 else 2 * d_model
        wih, whh, bias = [], [], []
        for _direction in range(2):
            w_ih = u((4 * d_model, d_in))
            w_hh = u((4 * d_model, d_model))
            b_ih = u((4 * d_model,))
            b_hh = u((4 * d_model,))
            wih.append(w_ih.T)            # (Din, 4H)
            whh.append(w_hh.T)            # (H, 4H)
            bias.append(b_ih + b_hh)      # biases fused
        params["lstm"].append({
            "wih": jnp.stack(wih, axis=0),    # (2, Din, 4H)
            "whh": jnp.stack(whh, axis=0),    # (2, H, 4H)
            "bias": jnp.stack(bias, axis=0),  # (2, 4H)
        })
    return params


# ----------------------------------- Main ------------------------------------------

if __name__ == "__main__":
    B, T = 2, 8
    D_MODEL = 32          # 4H = 128 -> lane-aligned gate matmul width
    WORD_NUM = 64         # small synthetic vocab (stands in for the BERT vocab)
    LAYERS = 2

    root = jax.random.PRNGKey(0)
    pkey, tkey = jax.random.split(root)
    params = init_params(pkey, WORD_NUM, D_MODEL, LAYERS)
    question = jax.random.randint(tkey, (B, T), 0, WORD_NUM, dtype=jnp.int32)

    # time_chunk=4 -> 2 chunks per direction, exercising the chunk-level reversal.
    question_hidden, (h, c) = lstm_encoder_forward(question, params, LAYERS,
                                                   time_chunk=4)
    jax.block_until_ready((question_hidden, h, c))

    assert question_hidden.shape == (B, T, 2 * D_MODEL)
    assert h.shape == (LAYERS, B, D_MODEL)
    assert c.shape == (LAYERS, B, D_MODEL)

    # correctness check against a pure-JAX reference with matching numerics
    qh_ref, (h_ref, c_ref) = ref_encoder_forward(question, params, LAYERS)
    np.testing.assert_allclose(np.asarray(question_hidden), np.asarray(qh_ref),
                               rtol=2e-2, atol=2e-2)
    np.testing.assert_allclose(np.asarray(h), np.asarray(h_ref), rtol=2e-2, atol=2e-2)
    np.testing.assert_allclose(np.asarray(c), np.asarray(c_ref), rtol=2e-2, atol=2e-2)

    print("KERNEL_OK")
</pallas_src>

<mosaic_0001>
module attributes {stable_mosaic.version = 11 : i64} {
  func.func @_bilstm_layer_kernel(%arg0: i32, %arg1: i32, %arg2: memref<1x4x2x128xf32, #tpu.memory_space<vmem>>, %arg3: memref<1x32x128xbf16, #tpu.memory_space<vmem>>, %arg4: memref<1x4x2x32xf32, #tpu.memory_space<vmem>>, %arg5: memref<1x2x32xf32, #tpu.memory_space<vmem>>, %arg6: memref<2x32xf32, #tpu.memory_space<vmem>>, %arg7: memref<2x32xf32, #tpu.memory_space<vmem>>) attributes {dimension_semantics = [#tpu.dimension_semantics<parallel>, #tpu.dimension_semantics<arbitrary>], iteration_bounds = array<i64: 2, 2>, scalar_prefetch = 0 : i64, scratch_operands = 2 : i64, tpu.core_type = #tpu.core_type<tc>, window_params = [{transform_indices = @transform_0, window_bounds = array<i64: 1, 4, 2, 128>}, {transform_indices = @transform_1, window_bounds = array<i64: 1, 32, 128>}, {transform_indices = @transform_2, window_bounds = array<i64: 1, 4, 2, 32>}, {transform_indices = @transform_3, window_bounds = array<i64: 1, 2, 32>}]} {
    %c0_i32 = arith.constant 0 : i32
    %0 = arith.cmpi eq, %arg1, %c0_i32 : i32
    %1 = arith.extui %0 : i1 to i32
    %c0_i32_0 = arith.constant 0 : i32
    %2 = arith.cmpi ne, %1, %c0_i32_0 : i32
    scf.if %2 {
      %cst_85 = arith.constant 0.000000e+00 : f32
      %180 = vector.broadcast %cst_85 : f32 to vector<2x32xf32>
      %c0_86 = arith.constant 0 : index
      %c0_87 = arith.constant 0 : index
      %181 = vector.load %arg6[%c0_86, %c0_87] : memref<2x32xf32, #tpu.memory_space<vmem>>, vector<2x32xf32>
      tpu.vector_store %arg6[%c0_86, %c0_87], %180 {strides = array<i32>} : memref<2x32xf32, #tpu.memory_space<vmem>>, vector<2x32xf32>,
      %cst_88 = arith.constant 0.000000e+00 : f32
      %182 = vector.broadcast %cst_88 : f32 to vector<2x32xf32>
      %c0_89 = arith.constant 0 : index
      %c0_90 = arith.constant 0 : index
      %183 = vector.load %arg7[%c0_89, %c0_90] : memref<2x32xf32, #tpu.memory_space<vmem>>, vector<2x32xf32>
      tpu.vector_store %arg7[%c0_89, %c0_90], %182 {strides = array<i32>} : memref<2x32xf32, #tpu.memory_space<vmem>>, vector<2x32xf32>,
    } else {
    }
    %c0 = arith.constant 0 : index
    %c0_1 = arith.constant 0 : index
    %c0_2 = arith.constant 0 : index
    %3 = vector.load %arg3[%c0, %c0_1, %c0_2] : memref<1x32x128xbf16, #tpu.memory_space<vmem>>, vector<1x32x128xbf16>
    %4 = vector.shape_cast %3 : vector<1x32x128xbf16> to vector<32x128xbf16>
    %c0_i32_3 = arith.constant 0 : i32
    %c2_i32 = arith.constant 2 : i32
    %5 = arith.muli %c2_i32, %c0_i32_3 : i32
    %c3_i32 = arith.constant 3 : i32
    %6 = arith.subi %c3_i32, %5 : i32
    %7 = arith.muli %arg0, %6 : i32
    %8 = arith.addi %c0_i32_3, %7 : i32
    %c0_4 = arith.constant 0 : index
    %9 = arith.index_cast %8 : i32 to index
    %c0_5 = arith.constant 0 : index
    %c0_6 = arith.constant 0 : index
    %10 = vector.load %arg2[%c0_4, %9, %c0_5, %c0_6] : memref<1x4x2x128xf32, #tpu.memory_space<vmem>>, vector<1x1x2x128xf32>
    %11 = vector.shape_cast %10 : vector<1x1x2x128xf32> to vector<2x128xf32>
    %c0_7 = arith.constant 0 : index
    %c0_8 = arith.constant 0 : index
    %12 = vector.load %arg6[%c0_7, %c0_8] : memref<2x32xf32, #tpu.memory_space<vmem>>, vector<2x32xf32>
    %13 = arith.truncf %12 : vector<2x32xf32> to vector<2x32xbf16>
    %cst = arith.constant dense<0.000000e+00> : vector<2x128xf32>
    %14 = tpu.matmul %13, %4, %cst {dimension_numbers = #tpu.dot_dimension_numbers<[1], [0], [0], [1], [0, 0, 1, 1], [], []>} : vector<2x32xbf16>, vector<32x128xbf16>, vector<2x128xf32> -> vector<2x128xf32>
    %15 = arith.addf %11, %14 : vector<2x128xf32>
    %16 = vector.extract_strided_slice %15 {offsets = [0, 0], sizes = [2, 32], strides = [1, 1]} : vector<2x128xf32> to vector<2x32xf32>
    %17 = arith.negf %16 : vector<2x32xf32>
    %18 = math.exp %17 : vector<2x32xf32>
    %cst_9 = arith.constant 1.000000e+00 : f32
    %19 = vector.broadcast %cst_9 : f32 to vector<2x32xf32>
    %20 = arith.addf %19, %18 : vector<2x32xf32>
    %21 = arith.divf %19, %20 : vector<2x32xf32>
    %22 = vector.extract_strided_slice %15 {offsets = [0, 32], sizes = [2, 32], strides = [1, 1]} : vector<2x128xf32> to vector<2x32xf32>
    %23 = arith.negf %22 : vector<2x32xf32>
    %24 = math.exp %23 : vector<2x32xf32>
    %cst_10 = arith.constant 1.000000e+00 : f32
    %25 = vector.broadcast %cst_10 : f32 to vector<2x32xf32>
    %26 = arith.addf %25, %24 : vector<2x32xf32>
    %27 = arith.divf %25, %26 : vector<2x32xf32>
    %28 = vector.extract_strided_slice %15 {offsets = [0, 64], sizes = [2, 32], strides = [1, 1]} : vector<2x128xf32> to vector<2x32xf32>
    %29 = math.tanh %28 : vector<2x32xf32>
    %30 = vector.extract_strided_slice %15 {offsets = [0, 96], sizes = [2, 32], strides = [1, 1]} : vector<2x128xf32> to vector<2x32xf32>
    %31 = arith.negf %30 : vector<2x32xf32>
    %32 = math.exp %31 : vector<2x32xf32>
    %cst_11 = arith.constant 1.000000e+00 : f32
    %33 = vector.broadcast %cst_11 : f32 to vector<2x32xf32>
    %34 = arith.addf %33, %32 : vector<2x32xf32>
    %35 = arith.divf %33, %34 : vector<2x32xf32>
    %c0_12 = arith.constant 0 : index
    %c0_13 = arith.constant 0 : index
    %36 = vector.load %arg7[%c0_12, %c0_13] : memref<2x32xf32, #tpu.memory_space<vmem>>, vector<2x32xf32>
    %37 = arith.mulf %27, %36 : vector<2x32xf32>
    %38 = arith.mulf %21, %29 : vector<2x32xf32>
    %39 = arith.addf %37, %38 : vector<2x32xf32>
    %40 = math.tanh %39 : vector<2x32xf32>
    %41 = arith.mulf %35, %40 : vector<2x32xf32>
    %c0_14 = arith.constant 0 : index
    %c0_15 = arith.constant 0 : index
    %42 = vector.load %arg7[%c0_14, %c0_15] : memref<2x32xf32, #tpu.memory_space<vmem>>, vector<2x32xf32>
    tpu.vector_store %arg7[%c0_14, %c0_15], %39 {strides = array<i32>} : memref<2x32xf32, #tpu.memory_space<vmem>>, vector<2x32xf32>,
    %c0_16 = arith.constant 0 : index
    %c0_17 = arith.constant 0 : index
    %43 = vector.load %arg6[%c0_16, %c0_17] : memref<2x32xf32, #tpu.memory_space<vmem>>, vector<2x32xf32>
    tpu.vector_store %arg6[%c0_16, %c0_17], %41 {strides = array<i32>} : memref<2x32xf32, #tpu.memory_space<vmem>>, vector<2x32xf32>,
    %c0_18 = arith.constant 0 : index
    %44 = arith.index_cast %8 : i32 to index
    %c0_19 = arith.constant 0 : index
    %c0_20 = arith.constant 0 : index
    %45 = vector.load %arg4[%c0_18, %44, %c0_19, %c0_20] : memref<1x4x2x32xf32, #tpu.memory_space<vmem>>, vector<1x1x2x32xf32>
    %46 = vector.shape_cast %45 : vector<1x1x2x32xf32> to vector<2x32xf32>
    %47 = vector.shape_cast %41 : vector<2x32xf32> to vector<1x1x2x32xf32>
    tpu.vector_store %arg4[%c0_18, %44, %c0_19, %c0_20], %47 {strides = array<i32>} : memref<1x4x2x32xf32, #tpu.memory_space<vmem>>, vector<1x1x2x32xf32>,
    %c1_i32 = arith.constant 1 : i32
    %c2_i32_21 = arith.constant 2 : i32
    %48 = arith.muli %c2_i32_21, %c1_i32 : i32
    %c3_i32_22 = arith.constant 3 : i32
    %49 = arith.subi %c3_i32_22, %48 : i32
    %50 = arith.muli %arg0, %49 : i32
    %51 = arith.addi %c1_i32, %50 : i32
    %c0_23 = arith.constant 0 : index
    %52 = arith.index_cast %51 : i32 to index
    %c0_24 = arith.constant 0 : index
    %c0_25 = arith.constant 0 : index
    %53 = vector.load %arg2[%c0_23, %52, %c0_24, %c0_25] : memref<1x4x2x128xf32, #tpu.memory_space<vmem>>, vector<1x1x2x128xf32>
    %54 = vector.shape_cast %53 : vector<1x1x2x128xf32> to vector<2x128xf32>
    %c0_26 = arith.constant 0 : index
    %c0_27 = arith.constant 0 : index
    %55 = vector.load %arg6[%c0_26, %c0_27] : memref<2x32xf32, #tpu.memory_space<vmem>>, vector<2x32xf32>
    %56 = arith.truncf %55 : vector<2x32xf32> to vector<2x32xbf16>
    %cst_28 = arith.constant dense<0.000000e+00> : vector<2x128xf32>
    %57 = tpu.matmul %56, %4, %cst_28 {dimension_numbers = #tpu.dot_dimension_numbers<[1], [0], [0], [1], [0, 0, 1, 1], [], []>} : vector<2x32xbf16>, vector<32x128xbf16>, vector<2x128xf32> -> vector<2x128xf32>
    %58 = arith.addf %54, %57 : vector<2x128xf32>
    %59 = vector.extract_strided_slice %58 {offsets = [0, 0], sizes = [2, 32], strides = [1, 1]} : vector<2x128xf32> to vector<2x32xf32>
    %60 = arith.negf %59 : vector<2x32xf32>
    %61 = math.exp %60 : vector<2x32xf32>
    %cst_29 = arith.constant 1.000000e+00 : f32
    %62 = vector.broadcast %cst_29 : f32 to vector<2x32xf32>
    %63 = arith.addf %62, %61 : vector<2x32xf32>
    %64 = arith.divf %62, %63 : vector<2x32xf32>
    %65 = vector.extract_strided_slice %58 {offsets = [0, 32], sizes = [2, 32], strides = [1, 1]} : vector<2x128xf32> to vector<2x32xf32>
    %66 = arith.negf %65 : vector<2x32xf32>
    %67 = math.exp %66 : vector<2x32xf32>
    %cst_30 = arith.constant 1.000000e+00 : f32
    %68 = vector.broadcast %cst_30 : f32 to vector<2x32xf32>
    %69 = arith.addf %68, %67 : vector<2x32xf32>
    %70 = arith.divf %68, %69 : vector<2x32xf32>
    %71 = vector.extract_strided_slice %58 {offsets = [0, 64], sizes = [2, 32], strides = [1, 1]} : vector<2x128xf32> to vector<2x32xf32>
    %72 = math.tanh %71 : vector<2x32xf32>
    %73 = vector.extract_strided_slice %58 {offsets = [0, 96], sizes = [2, 32], strides = [1, 1]} : vector<2x128xf32> to vector<2x32xf32>
    %74 = arith.negf %73 : vector<2x32xf32>
    %75 = math.exp %74 : vector<2x32xf32>
    %cst_31 = arith.constant 1.000000e+00 : f32
    %76 = vector.broadcast %cst_31 : f32 to vector<2x32xf32>
    %77 = arith.addf %76, %75 : vector<2x32xf32>
    %78 = arith.divf %76, %77 : vector<2x32xf32>
    %c0_32 = arith.constant 0 : index
    %c0_33 = arith.constant 0 : index
    %79 = vector.load %arg7[%c0_32, %c0_33] : memref<2x32xf32, #tpu.memory_space<vmem>>, vector<2x32xf32>
    %80 = arith.mulf %70, %79 : vector<2x32xf32>
    %81 = arith.mulf %64, %72 : vector<2x32xf32>
    %82 = arith.addf %80, %81 : vector<2x32xf32>
    %83 = math.tanh %82 : vector<2x32xf32>
    %84 = arith.mulf %78, %83 : vector<2x32xf32>
    %c0_34 = arith.constant 0 : index
    %c0_35 = arith.constant 0 : index
    %85 = vector.load %arg7[%c0_34, %c0_35] : memref<2x32xf32, #tpu.memory_space<vmem>>, vector<2x32xf32>
    tpu.vector_store %arg7[%c0_34, %c0_35], %82 {strides = array<i32>} : memref<2x32xf32, #tpu.memory_space<vmem>>, vector<2x32xf32>,
    %c0_36 = arith.constant 0 : index
    %c0_37 = arith.constant 0 : index
    %86 = vector.load %arg6[%c0_36, %c0_37] : memref<2x32xf32, #tpu.memory_space<vmem>>, vector<2x32xf32>
    tpu.vector_store %arg6[%c0_36, %c0_37], %84 {strides = array<i32>} : memref<2x32xf32, #tpu.memory_space<vmem>>, vector<2x32xf32>,
    %c0_38 = arith.constant 0 : index
    %87 = arith.index_cast %51 : i32 to index
    %c0_39 = arith.constant 0 : index
    %c0_40 = arith.constant 0 : index
    %88 = vector.load %arg4[%c0_38, %87, %c0_39, %c0_40] : memref<1x4x2x32xf32, #tpu.memory_space<vmem>>, vector<1x1x2x32xf32>
    %89 = vector.shape_cast %88 : vector<1x1x2x32xf32> to vector<2x32xf32>
    %90 = vector.shape_cast %84 : vector<2x32xf32> to vector<1x1x2x32xf32>
    tpu.vector_store %arg4[%c0_38, %87, %c0_39, %c0_40], %90 {strides = array<i32>} : memref<1x4x2x32xf32, #tpu.memory_space<vmem>>, vector<1x1x2x32xf32>,
    %c2_i32_41 = arith.constant 2 : i32
    %c2_i32_42 = arith.constant 2 : i32
    %91 = arith.muli %c2_i32_42, %c2_i32_41 : i32
    %c3_i32_43 = arith.constant 3 : i32
    %92 = arith.subi %c3_i32_43, %91 : i32
    %93 = arith.muli %arg0, %92 : i32
    %94 = arith.addi %c2_i32_41, %93 : i32
    %c0_44 = arith.constant 0 : index
    %95 = arith.index_cast %94 : i32 to index
    %c0_45 = arith.constant 0 : index
    %c0_46 = arith.constant 0 : index
    %96 = vector.load %arg2[%c0_44, %95, %c0_45, %c0_46] : memref<1x4x2x128xf32, #tpu.memory_space<vmem>>, vector<1x1x2x128xf32>
    %97 = vector.shape_cast %96 : vector<1x1x2x128xf32> to vector<2x128xf32>
    %c0_47 = arith.constant 0 : index
    %c0_48 = arith.constant 0 : index
    %98 = vector.load %arg6[%c0_47, %c0_48] : memref<2x32xf32, #tpu.memory_space<vmem>>, vector<2x32xf32>
    %99 = arith.truncf %98 : vector<2x32xf32> to vector<2x32xbf16>
    %cst_49 = arith.constant dense<0.000000e+00> : vector<2x128xf32>
    %100 = tpu.matmul %99, %4, %cst_49 {dimension_numbers = #tpu.dot_dimension_numbers<[1], [0], [0], [1], [0, 0, 1, 1], [], []>} : vector<2x32xbf16>, vector<32x128xbf16>, vector<2x128xf32> -> vector<2x128xf32>
    %101 = arith.addf %97, %100 : vector<2x128xf32>
    %102 = vector.extract_strided_slice %101 {offsets = [0, 0], sizes = [2, 32], strides = [1, 1]} : vector<2x128xf32> to vector<2x32xf32>
    %103 = arith.negf %102 : vector<2x32xf32>
    %104 = math.exp %103 : vector<2x32xf32>
    %cst_50 = arith.constant 1.000000e+00 : f32
    %105 = vector.broadcast %cst_50 : f32 to vector<2x32xf32>
    %106 = arith.addf %105, %104 : vector<2x32xf32>
    %107 = arith.divf %105, %106 : vector<2x32xf32>
    %108 = vector.extract_strided_slice %101 {offsets = [0, 32], sizes = [2, 32], strides = [1, 1]} : vector<2x128xf32> to vector<2x32xf32>
    %109 = arith.negf %108 : vector<2x32xf32>
    %110 = math.exp %109 : vector<2x32xf32>
    %cst_51 = arith.constant 1.000000e+00 : f32
    %111 = vector.broadcast %cst_51 : f32 to vector<2x32xf32>
    %112 = arith.addf %111, %110 : vector<2x32xf32>
    %113 = arith.divf %111, %112 : vector<2x32xf32>
    %114 = vector.extract_strided_slice %101 {offsets = [0, 64], sizes = [2, 32], strides = [1, 1]} : vector<2x128xf32> to vector<2x32xf32>
    %115 = math.tanh %114 : vector<2x32xf32>
    %116 = vector.extract_strided_slice %101 {offsets = [0, 96], sizes = [2, 32], strides = [1, 1]} : vector<2x128xf32> to vector<2x32xf32>
    %117 = arith.negf %116 : vector<2x32xf32>
    %118 = math.exp %117 : vector<2x32xf32>
    %cst_52 = arith.constant 1.000000e+00 : f32
    %119 = vector.broadcast %cst_52 : f32 to vector<2x32xf32>
    %120 = arith.addf %119, %118 : vector<2x32xf32>
    %121 = arith.divf %119, %120 : vector<2x32xf32>
    %c0_53 = arith.constant 0 : index
    %c0_54 = arith.constant 0 : index
    %122 = vector.load %arg7[%c0_53, %c0_54] : memref<2x32xf32, #tpu.memory_space<vmem>>, vector<2x32xf32>
    %123 = arith.mulf %113, %122 : vector<2x32xf32>
    %124 = arith.mulf %107, %115 : vector<2x32xf32>
    %125 = arith.addf %123, %124 : vector<2x32xf32>
    %126 = math.tanh %125 : vector<2x32xf32>
    %127 = arith.mulf %121, %126 : vector<2x32xf32>
    %c0_55 = arith.constant 0 : index
    %c0_56 = arith.constant 0 : index
    %128 = vector.load %arg7[%c0_55, %c0_56] : memref<2x32xf32, #tpu.memory_space<vmem>>, vector<2x32xf32>
    tpu.vector_store %arg7[%c0_55, %c0_56], %125 {strides = array<i32>} : memref<2x32xf32, #tpu.memory_space<vmem>>, vector<2x32xf32>,
    %c0_57 = arith.constant 0 : index
    %c0_58 = arith.constant 0 : index
    %129 = vector.load %arg6[%c0_57, %c0_58] : memref<2x32xf32, #tpu.memory_space<vmem>>, vector<2x32xf32>
    tpu.vector_store %arg6[%c0_57, %c0_58], %127 {strides = array<i32>} : memref<2x32xf32, #tpu.memory_space<vmem>>, vector<2x32xf32>,
    %c0_59 = arith.constant 0 : index
    %130 = arith.index_cast %94 : i32 to index
    %c0_60 = arith.constant 0 : index
    %c0_61 = arith.constant 0 : index
    %131 = vector.load %arg4[%c0_59, %130, %c0_60, %c0_61] : memref<1x4x2x32xf32, #tpu.memory_space<vmem>>, vector<1x1x2x32xf32>
    %132 = vector.shape_cast %131 : vector<1x1x2x32xf32> to vector<2x32xf32>
    %133 = vector.shape_cast %127 : vector<2x32xf32> to vector<1x1x2x32xf32>
    tpu.vector_store %arg4[%c0_59, %130, %c0_60, %c0_61], %133 {strides = array<i32>} : memref<1x4x2x32xf32, #tpu.memory_space<vmem>>, vector<1x1x2x32xf32>,
    %c3_i32_62 = arith.constant 3 : i32
    %c2_i32_63 = arith.constant 2 : i32
    %134 = arith.muli %c2_i32_63, %c3_i32_62 : i32
    %c3_i32_64 = arith.constant 3 : i32
    %135 = arith.subi %c3_i32_64, %134 : i32
    %136 = arith.muli %arg0, %135 : i32
    %137 = arith.addi %c3_i32_62, %136 : i32
    %c0_65 = arith.constant 0 : index
    %138 = arith.index_cast %137 : i32 to index
    %c0_66 = arith.constant 0 : index
    %c0_67 = arith.constant 0 : index
    %139 = vector.load %arg2[%c0_65, %138, %c0_66, %c0_67] : memref<1x4x2x128xf32, #tpu.memory_space<vmem>>, vector<1x1x2x128xf32>
    %140 = vector.shape_cast %139 : vector<1x1x2x128xf32> to vector<2x128xf32>
    %c0_68 = arith.constant 0 : index
    %c0_69 = arith.constant 0 : index
    %141 = vector.load %arg6[%c0_68, %c0_69] : memref<2x32xf32, #tpu.memory_space<vmem>>, vector<2x32xf32>
    %142 = arith.truncf %141 : vector<2x32xf32> to vector<2x32xbf16>
    %cst_70 = arith.constant dense<0.000000e+00> : vector<2x128xf32>
    %143 = tpu.matmul %142, %4, %cst_70 {dimension_numbers = #tpu.dot_dimension_numbers<[1], [0], [0], [1], [0, 0, 1, 1], [], []>} : vector<2x32xbf16>, vector<32x128xbf16>, vector<2x128xf32> -> vector<2x128xf32>
    %144 = arith.addf %140, %143 : vector<2x128xf32>
    %145 = vector.extract_strided_slice %144 {offsets = [0, 0], sizes = [2, 32], strides = [1, 1]} : vector<2x128xf32> to vector<2x32xf32>
    %146 = arith.negf %145 : vector<2x32xf32>
    %147 = math.exp %146 : vector<2x32xf32>
    %cst_71 = arith.constant 1.000000e+00 : f32
    %148 = vector.broadcast %cst_71 : f32 to vector<2x32xf32>
    %149 = arith.addf %148, %147 : vector<2x32xf32>
    %150 = arith.divf %148, %149 : vector<2x32xf32>
    %151 = vector.extract_strided_slice %144 {offsets = [0, 32], sizes = [2, 32], strides = [1, 1]} : vector<2x128xf32> to vector<2x32xf32>
    %152 = arith.negf %151 : vector<2x32xf32>
    %153 = math.exp %152 : vector<2x32xf32>
    %cst_72 = arith.constant 1.000000e+00 : f32
    %154 = vector.broadcast %cst_72 : f32 to vector<2x32xf32>
    %155 = arith.addf %154, %153 : vector<2x32xf32>
    %156 = arith.divf %154, %155 : vector<2x32xf32>
    %157 = vector.extract_strided_slice %144 {offsets = [0, 64], sizes = [2, 32], strides = [1, 1]} : vector<2x128xf32> to vector<2x32xf32>
    %158 = math.tanh %157 : vector<2x32xf32>
    %159 = vector.extract_strided_slice %144 {offsets = [0, 96], sizes = [2, 32], strides = [1, 1]} : vector<2x128xf32> to vector<2x32xf32>
    %160 = arith.negf %159 : vector<2x32xf32>
    %161 = math.exp %160 : vector<2x32xf32>
    %cst_73 = arith.constant 1.000000e+00 : f32
    %162 = vector.broadcast %cst_73 : f32 to vector<2x32xf32>
    %163 = arith.addf %162, %161 : vector<2x32xf32>
    %164 = arith.divf %162, %163 : vector<2x32xf32>
    %c0_74 = arith.constant 0 : index
    %c0_75 = arith.constant 0 : index
    %165 = vector.load %arg7[%c0_74, %c0_75] : memref<2x32xf32, #tpu.memory_space<vmem>>, vector<2x32xf32>
    %166 = arith.mulf %156, %165 : vector<2x32xf32>
    %167 = arith.mulf %150, %158 : vector<2x32xf32>
    %168 = arith.addf %166, %167 : vector<2x32xf32>
    %169 = math.tanh %168 : vector<2x32xf32>
    %170 = arith.mulf %164, %169 : vector<2x32xf32>
    %c0_76 = arith.constant 0 : index
    %c0_77 = arith.constant 0 : index
    %171 = vector.load %arg7[%c0_76, %c0_77] : memref<2x32xf32, #tpu.memory_space<vmem>>, vector<2x32xf32>
    tpu.vector_store %arg7[%c0_76, %c0_77], %168 {strides = array<i32>} : memref<2x32xf32, #tpu.memory_space<vmem>>, vector<2x32xf32>,
    %c0_78 = arith.constant 0 : index
    %c0_79 = arith.constant 0 : index
    %172 = vector.load %arg6[%c0_78, %c0_79] : memref<2x32xf32, #tpu.memory_space<vmem>>, vector<2x32xf32>
    tpu.vector_store %arg6[%c0_78, %c0_79], %170 {strides = array<i32>} : memref<2x32xf32, #tpu.memory_space<vmem>>, vector<2x32xf32>,
    %c0_80 = arith.constant 0 : index
    %173 = arith.index_cast %137 : i32 to index
    %c0_81 = arith.constant 0 : index
    %c0_82 = arith.constant 0 : index
    %174 = vector.load %arg4[%c0_80, %173, %c0_81, %c0_82] : memref<1x4x2x32xf32, #tpu.memory_space<vmem>>, vector<1x1x2x32xf32>
    %175 = vector.shape_cast %174 : vector<1x1x2x32xf32> to vector<2x32xf32>
    %176 = vector.shape_cast %170 : vector<2x32xf32> to vector<1x1x2x32xf32>
    tpu.vector_store %arg4[%c0_80, %173, %c0_81, %c0_82], %176 {strides = array<i32>} : memref<1x4x2x32xf32, #tpu.memory_space<vmem>>, vector<1x1x2x32xf32>,
    %c4_i32 = arith.constant 4 : i32
    %c1_i32_83 = arith.constant 1 : i32
    %177 = arith.cmpi eq, %arg1, %c1_i32_83 : i32
    %178 = arith.extui %177 : i1 to i32
    %c0_i32_84 = arith.constant 0 : i32
    %179 = arith.cmpi ne, %178, %c0_i32_84 : i32
    scf.if %179 {
      %c0_85 = arith.constant 0 : index
      %c0_86 = arith.constant 0 : index
      %180 = vector.load %arg7[%c0_85, %c0_86] : memref<2x32xf32, #tpu.memory_space<vmem>>, vector<2x32xf32>
      %c0_87 = arith.constant 0 : index
      %c0_88 = arith.constant 0 : index
      %c0_89 = arith.constant 0 : index
      %181 = vector.load %arg5[%c0_87, %c0_88, %c0_89] : memref<1x2x32xf32, #tpu.memory_space<vmem>>, vector<1x2x32xf32>
      %182 = vector.shape_cast %181 : vector<1x2x32xf32> to vector<2x32xf32>
      %183 = vector.shape_cast %180 : vector<2x32xf32> to vector<1x2x32xf32>
      tpu.vector_store %arg5[%c0_87, %c0_88, %c0_89], %183 {strides = array<i32>} : memref<1x2x32xf32, #tpu.memory_space<vmem>>, vector<1x2x32xf32>,
    } else {
    }
    return
  }
  func.func @transform_0(%arg0: i32, %arg1: i32) -> (i32, i32, i32, i32) {
    %c2_i32 = arith.constant 2 : i32
    %0 = arith.muli %c2_i32, %arg1 : i32
    %c1_i32 = arith.constant 1 : i32
    %1 = arith.subi %c1_i32, %0 : i32
    %2 = arith.muli %arg0, %1 : i32
    %3 = arith.addi %arg1, %2 : i32
    %c0_i32 = arith.constant 0 : i32
    %c0_i32_0 = arith.constant 0 : i32
    %c0_i32_1 = arith.constant 0 : i32
    return %arg0, %3, %c0_i32, %c0_i32_0 : i32, i32, i32, i32
  }
  func.func @transform_1(%arg0: i32, %arg1: i32) -> (i32, i32, i32) {
    %c0_i32 = arith.constant 0 : i32
    %c0_i32_0 = arith.constant 0 : i32
    %c0_i32_1 = arith.constant 0 : i32
    return %arg0, %c0_i32, %c0_i32_0 : i32, i32, i32
  }
  func.func @transform_2(%arg0: i32, %arg1: i32) -> (i32, i32, i32, i32) {
    %c2_i32 = arith.constant 2 : i32
    %0 = arith.muli %c2_i32, %arg1 : i32
    %c1_i32 = arith.constant 1 : i32
    %1 = arith.subi %c1_i32, %0 : i32
    %2 = arith.muli %arg0, %1 : i32
    %3 = arith.addi %arg1, %2 : i32
    %c0_i32 = arith.constant 0 : i32
    %c0_i32_0 = arith.constant 0 : i32
    %c0_i32_1 = arith.constant 0 : i32
    return %arg0, %3, %c0_i32, %c0_i32_0 : i32, i32, i32, i32
  }
  func.func @transform_3(%arg0: i32, %arg1: i32) -> (i32, i32, i32) {
    %c0_i32 = arith.constant 0 : i32
    %c0_i32_0 = arith.constant 0 : i32
    %c0_i32_1 = arith.constant 0 : i32
    return %arg0, %c0_i32, %c0_i32_0 : i32, i32, i32
  }
}

</mosaic_0001>

<bundles_post_ra>
// kernel: tpu_custom_call.1
= control target key start
LH: loop header
LB: loop body
LE: loop exit
PB: predicated region body
PF: predicated region fallthrough
CT: control target
= control target key end

     0   :  { %s1707_s0 = inlined_call_operand.hbm [shape: f32[2,8,2,128], index: 0, kind: input, shape index: {}]   ;;  %s1708_s1 = inlined_call_operand.hbm [shape: bf16[2,32,128], index: 1, kind: input, shape index: {}]   ;;  %s1709_s2 = inlined_call_operand.hbm [shape: f32[2,8,2,32], index: 2, kind: output, shape index: {0}]   ;;  %s1710_s3 = inlined_call_operand.hbm [shape: f32[2,2,32], index: 3, kind: output, shape index: {1}]  }
   0x1   :  { %1726 = sst [smem:[#allocation28_spill]] %s1707_s0 }
   0x2   :  { %1727 = sst [smem:[#allocation29_spill]] %s1708_s1 }
   0x3   :  { %1728 = sst [smem:[#allocation30_spill]] %s1709_s2 }
   0x4   :  { %9 = vsyncpa [#allocation5], 0 }
   0x5   :  { %11 = vsyncpa [#allocation5 + $0x1], 0 }
   0x6   :  { %12 = vsyncpa [#allocation8], 0 }
   0x7   :  { %14 = vsyncpa [#allocation8 + $0x1], 0 }
   0x8   :  { %15 = vsyncpa [#allocation6], 0 }
   0x9   :  { %17 = vsyncpa [#allocation6 + $0x1], 0 }
   0xa   :  { %18 = vsyncpa [#allocation11], 0 }
   0xb   :  { %20 = vsyncpa [#allocation11 + $0x1], 0  ;;  %s1307_s12 = smov 0   ;;  %s1309_s13 = smov 0  }
   0xc   :  { %s1311_s14 = smov 0   ;;  %s1313_s15 = smov 0  }
   0xd   :  { %s1315_s16 = smov 0   ;;  %s1317_s17 = smov 0  }
   0xe   :  { %s1319_s18 = smov 0   ;;  %s1321_s19 = smov 0  }
   0xf   :  { %s1323_s20 = smov 0   ;;  %s1325_s21 = smov 0  }
  0x10   :  { %s1327_s22 = smov 0  }
  0x11 LB: > { %1729 = sst [smem:[#allocation16_spill]] %s1244_s14  ;;  %s844_s23 = sadd.s32 4294967295, %s1276_s22   ;;  %s1276_s22 = sphi %s1327_s22, %s26_s22   ;;  %s1272_s21 = sphi %s1325_s21, %s1775_s21   ;;  %s1268_s20 = sphi %s1323_s20, %s1774_s20   ;;  %s1264_s19 = sphi %s1321_s19, %s1773_s19   ;;  %s1260_s18 = sphi %s1319_s18, %s1772_s18   ;;  %s1256_s17 = sphi %s1317_s17, %s1771_s17   ;;  %s1252_s16 = sphi %s1315_s16, %s1770_s16   ;;  %s1248_s15 = sphi %s1313_s15, %s1769_s15   ;;  %s1244_s14 = sphi %s1311_s14, %s1768_s14   ;;  %s1240_s13 = sphi %s1309_s13, %s1777_s13   ;;  %s1236_s12 = sphi %s1307_s12, %s1776_s12  }
  0x12   : > { %1730 = sst [smem:[#allocation17_spill]] %s1248_s15  ;;  %s845_s24 = sadd.s32 4294967294, %s1276_s22  }
  0x13   : > { %1731 = sst [smem:[#allocation18_spill]] %s1252_s16  ;;  %s35_s25 = sadd.s32 1, %s1268_s20 }
  0x14   : > { %1732 = sst [smem:[#allocation19_spill]] %s1256_s17  ;;  %s38_s26 = sadd.s32 1, %s1272_s21 }
  0x15   : > { %1733 = sst [smem:[#allocation20_spill]] %s1268_s20  ;;  %p36_p0 = scmp.ge.s32.totalorder %s35_s25, 2 }
  0x16   : > { %1734 = sst [smem:[#allocation21_spill]] %s1272_s21  ;;  %s846_s27 = sshll.u32 %s1268_s20, 1 }
  0x17   : > { %s43_s28 = ssub.s32 1, %s846_s27  ;;  %s55_s29 = sadd.s32 1, %s1256_s17 }
  0x18   : > { %s1779_s25 = smov (%p36_p0, %s35_s25), 0  ;;  %s1781_s26 = smov (!%p36_p0, %s38_s26), %s1272_s21 }
  0x19   : > { %1735 = sst [smem:[#allocation22_spill]] %s1779_s25  ;;  %s44_s30 = smul.u32 %s1272_s21, %s43_s28 }
  0x1a   : > { %s847_s4 = sshll.u32 %s1779_s25, 1  ;;  %p40_p1 = scmp.ge.s32.totalorder %s1781_s26, 2 }
  0x1b   : > { %s47_s5 = ssub.s32 1, %s847_s4  ;;  %s45_s6 = sadd.s32 %s1268_s20, %s44_s30 }
  0x1c   : > { %p62_p2 = scmp.ne.s32.totalorder %s1256_s17, %s1252_s16  ;;  %s1783_s26 = smov (%p40_p1, %s1781_s26), 0 }
  0x1d   : > { %1736 = sst [smem:[#allocation23_spill]] %s1783_s26  ;;  %p1719_p3 = scmp.eq.s32.totalorder %s1276_s22, 0 }
  0x1e   : > { %p68_p4 = scmp.ne.s32.totalorder %s1252_s16, %s1248_s15  ;;  %s48_s7 = smul.u32 %s47_s5, %s1783_s26 }
  0x1f   : > { %s1384_s8 = ssub.s32 %s1272_s21, %s1783_s26  ;;  %p1391_p5 = por %p1719_p3, %p62_p2 }
  0x20   : > { %p1395_p6 = scmp.eq.s32.totalorder %s844_s23, 0  ;;  %s49_s11 = sadd.s32 %s48_s7, %s1779_s25 }
  0x21   : > { %s51_s27 = ssub.s32 %s45_s6, %s49_s11  ;;  %p1411_p9 = scmp.eq.s32.totalorder %s844_s23, 3 }
  0x22   : > { %p1406_p8 = por %p1395_p6, %p68_p4  ;;  %s52_s30 = sor.u32 %s51_s27, %s1384_s8 }
  0x23   : > { %p53_p10 = scmp.eq.s32.totalorder %s52_s30, 0  ;;  %p1415_p11 = scmp.eq.s32.totalorder %s845_s24, 3 }
  0x24   : > { %p1424_p12 = por %p1411_p9, %p62_p2  ;;  %p1720_p0 = scmp.lt.s32.totalorder %s1276_s22, 4 }
  0x25   : > { %s1429_s11 = scalar_select %p53_p10, %s1256_s17, %s55_s29  }
  0x26   : > { %s1742_s7 = scalar_select %p1424_p12, 1, 0 }
  0x27   : > { %1744 = sst [smem:[#allocation25_spill]] %s1429_s11  ;;  %p1436_p13 = por %p1415_p11, %p68_p4 }
  0x28   : > { %1743 = sst [smem:[#allocation24_spill]] %s1742_s7  ;;  %s180_s24 = sand.u32 1, %s1256_s17  }
  0x29   : > { %s1745_s23 = scalar_select %p1436_p13, 1, 0 }
  0x2a   : > { %s854_s27 = sshll.u32 %s45_s6, 2  ;;  %s852_s30 = sshll.u32 %s180_s24, 3 }
  0x2b   : > { %1746 = sst [smem:[#allocation26_spill]] %s1745_s23  ;;  %s855_s26 = sshll.u32 %s1272_s21, 3 }
  0x2c   : > { %s193_s25 = sadd.s32 %s855_s26, %s854_s27  ;;  %s184_s20 = scalar_lea.vmem [#allocation4], %s852_s30 }
  0x2d   : > { %s1443_s2 = sshll.u32 %s184_s20, 4  ;;  %s856_s7 = sshll.u32 %s193_s25, 1  ;;  %s199_s2 = int_to_ptr.vmem [resolvable:$true] %s1443_s2 }
  0x2e   : > { %s1747_s0 = sld [smem:[#allocation28_spill]]  ;;  %p1453_p1 = pnand %p1720_p0, %p1391_p5 }
  0x2f   : > { %s181_s26 = scalar_lea.sflag [#allocation5], %s180_s24 }
  0x30   : > { %p1062_p10 = pneg %p1453_p1 }
  0x34   : > { %s195_s15 = scalar_lea.hbm %s1747_s0, %s856_s7  ;;  %s1065_s7 = scalar_lea.hbm %s1747_s0, 32 }
  0x35   : > { %s196_s6 = sshll.u32 %s195_s15, 4  ;;  %s197_s6 = int_to_ptr.hbm [resolvable:$true] %s196_s6 }
  0x36   : > { %s1058_s20 = sshra.s32 %s197_s6, 4  ;;  %s1059_s20 = int_to_ptr.hbm [resolvable:$true] %s1058_s20 }
  0x37   : > { %s1060_s27 = scalar_lea.hbm %s1059_s20, 8  ;;  %p1066_p5 = scmp.lt.s32.totalorder %s1059_s20, %s1747_s0 }
  0x38   : > { %p1061_p4 = scmp.ne.s32.totalorder %s1059_s20, %s1060_s27  ;;  %p1067_p0 = scmp.lt.s32.totalorder %s1065_s7, %s1060_s27 }
  0x3a   : > { %p1063_p3 = pnand %p1062_p10, %p1061_p4  ;;  %p1068_p13 = por %p1067_p0, %p1066_p5 }
  0x3c   : > { %p1064_p7 = pneg %p1063_p3 }
  0x3e   : > { %p1069_p2 = pnand %p1068_p13, %p1064_p7 }
  0x40   : > { %1072 = shalt.err (!%p1069_p2)
}
  0x41   : > { %s1278_s15 = smov 32   ;;  %s1279_s24 = smov 2  }
  0x42   : > { %916 = dma.hbm_to_vmem [thread:$0]  (!%p1453_p1), %s197_s6, 128, %s199_s2, %s181_s26, %s1278_s15, %s1278_s15, %s1279_s24  }
  0x43   : > { %p228_p3 = scmp.lt.s32.totalorder %s1276_s22, 5  ;;  %p1749_p7 = scmp.ge.s32.totalorder %s1276_s22, 1 }
  0x44   : > { %s81_s20 = sadd.s32 1, %s1244_s14  ;;  %p88_p0 = scmp.ne.s32.totalorder %s1244_s14, %s1240_s13 }
  0x45   : > { %p1471_p13 = pnand %p1749_p7, %p228_p3  ;;  %p1751_p2 = scmp.eq.s32.totalorder %s1384_s8, 0 }
  0x46   : > { %p1753_p4 = scmp.eq.s32.totalorder %s1276_s22, 0  ;;  %p94_p5 = scmp.ne.s32.totalorder %s1240_s13, %s1236_s12 }
  0x47   : > { %s1481_s27 = scalar_select %p1751_p2, %s1244_s14, %s81_s20  }
  0x48   : > { %p1485_p10 = por %p88_p0, %p1753_p4  ;;  %p1493_p1 = por %p1411_p9, %p88_p0 }
  0x49   : > { %1752 = sst [smem:[#allocation27_spill]] %s1481_s27  ;;  %s208_s23 = sand.u32 1, %s1244_s14  }
  0x4a   : > { %p1500_p3 = por %p94_p5, %p1395_p6  ;;  %p1506_p7 = por %p1415_p11, %p94_p5 }
  0x4b   : > { %s857_s26 = sshll.u32 %s208_s23, 4  ;;  %s902_s9 = sshll.u32 %s1272_s21, 4 }
  0x4c   : > { %s1758_s1 = sld [smem:[#allocation29_spill]]  ;;  %s212_s30 = scalar_lea.vmem [#allocation7], %s857_s26 }
  0x4d   : > { %s220_s15 = sshll.u32 %s212_s30, 4  ;;  %p1759_p6 = scmp.lt.s32.totalorder %s1276_s22, 4  ;;  %s221_s15 = int_to_ptr.vmem [resolvable:$true] %s220_s15 }
  0x4e   : > { %s209_s10 = scalar_lea.sflag [#allocation8], %s208_s23  ;;  %s1280_s5 = smov 64  }
  0x4f   : > { %p917_p9 = pnand %p1759_p6, %p1485_p10  ;;  %s1281_s20 = smov 4  }
  0x50   : > { %232 = sbr.rel (%p1471_p13) target bundleno = 2503 (0x9c7), region = 28  ;;  %s1521_s0 = sand.u32 (!%p1471_p13), 1, %s1252_s16  }
  0x51   : > { %s861_s26 = sshll.u32 (!%p1471_p13), %s1521_s0, 3 }
  0x52   : > { %s217_s4 = scalar_lea.hbm %s1758_s1, %s902_s9  ;;  %s235_s9 = scalar_lea.sflag (!%p1471_p13), [#allocation5], %s1521_s0 }
  0x53   : > { %s218_s24 = sshll.u32 %s217_s4, 4  ;;  %s1525_s7 = scalar_lea.vmem (!%p1471_p13), [#allocation4], %s861_s26  ;;  %s219_s24 = int_to_ptr.hbm [resolvable:$true] %s218_s24 }
  0x54   : > { %919 = dma.hbm_to_vmem [thread:$0]  (!%p917_p9), %s219_s24, 256, %s221_s15, %s209_s10, %s1280_s5, %s1280_s5, %s1281_s20  }
  0x55   : > { %1219 = dma.done.wait (%p1406_p8), %s235_s9, 128  }
  0x56   : > { %1221 = vsyncadd (%p1406_p8), %s235_s9, 4294967168  ;;  %s1532_s25 = sand.u32 1, %s1240_s13  }
  0x57   : > { %s862_s29 = sshll.u32 %s1532_s25, 4  ;;  %s245_s23 = scalar_lea.sflag [#allocation8], %s1532_s25 }
  0x58   : > { %s248_s11 = scalar_lea.vmem [#allocation7], %s862_s29 }
  0x59   : > { %1223 = dma.done.wait (%p1500_p3), %s245_s23, 256  }
  0x5a   : > { %1225 = vsyncadd (%p1500_p3), %s245_s23, 4294967040  ;;  %s864_s4 = sshll.u32 %s1532_s25, 1  ;;  %s1541_s30 = scalar_lea.vmem [#allocation9], %s861_s26 }
  0x5b   : > { %s1543_s28 = scalar_lea.vmem [#allocation10], %s864_s4  ;;  %p865_p8 = scmp.ne.s32.totalorder %s1260_s18, 0 }
  0x5d   : > { %296 = sbr.rel (%p865_p8) target bundleno = 101 (0x65), region = 40 }
  0x62   : > { %vm297_vm0 = vcmask 254976   ;;  %v1282_v0 = vmov 0.0  }
  0x63   : > { %298 = vst.msk [vmem:[#allocation2] sm:$0x3] %vm297_vm0, %v1282_v0 }
  0x64   : > { %299 = vst.msk [vmem:[#allocation3] sm:$0x3] %vm297_vm0, %v1282_v0 }
  0x65 PF: > { %v904_v1 = vld [vmem:[%s248_s11 + $0x8] sm:$0xff]  ;;  %v903_v2 = vld [vmem:[%s248_s11] sm:$0xff]  ;;  %vm322_vm1 = vcmask 261120   ;;  %s866_s6 = smul.u32 6, %s1264_s19  ;;  %s1283_s24 = smov 64   ;;  %vm386_vm6 = vcmask 254976  }
  0x66   : > { %332 = vmatpush.bf16.msra.mxu0 %v904_v1  ;;  %410 = vmatpush.bf16.msra.mxu1 %v904_v1  ;;  %s1721_s10 = smov 32   ;;  %s1285_s5 = smov 96  }
  0x67   : > { %487 = vmatpush.bf16.msra.mxu2 %v904_v1  ;;  %565 = vmatpush.bf16.msra.mxu3 %v904_v1  ;;  %s306_s15 = scalar_lea.vmem %s1525_s7, %s866_s6 [#allocation4]  ;;  %s393_s20 = scalar_lea.vmem %s1541_s30, %s866_s6 [#allocation9] }
  0x68   : > { %v307_v5 = vld [vmem:[%s306_s15] sm:$0x3]  ;;  %s1566_s26 = sshll.u32 %s1264_s19, 1  ;;  %s472_s23 = ssub.s32 2, %s1264_s19 }
  0x69   : > { %s754_s9 = scalar_lea.vmem %s1525_s7, %s1566_s26 [#allocation4]  ;;  %s757_s29 = scalar_lea.vmem %s1541_s30, %s1566_s26 [#allocation9] }
  0x6a   : > { %v308_v3 = vld [vmem:[#allocation2] sm:$0x3]  ;;  %333 = vmatpush.bf16.msra.mxu0 %v903_v2  ;;  %411 = vmatpush.bf16.msra.mxu1 %v903_v2  ;;  %v878_v38 = vld [vmem:[%s754_s9 + $0x2] sm:$0x3]  ;;  %s1583_s11 = sshll.u32 %s472_s23, 1  ;;  %s886_s15 = smul.u32 4294967290, %s1264_s19 }
  0x6b   : > { %v309_v4 = vpack.c.bf16 %v308_v3, %v308_v3  ;;  %488 = vmatpush.bf16.msra.mxu2 %v903_v2  ;;  %566 = vmatpush.bf16.msra.mxu3 %v903_v2  ;;  %v360_v10 = vld [vmem:[#allocation3] sm:$0x3]  ;;  %s474_s4 = scalar_lea.vmem %s1525_s7, %s1583_s11 [#allocation4]  ;;  %s547_s6 = scalar_lea.vmem %s1541_s30, %s1583_s11 [#allocation9] }
  0x6c   : > { %p892_p11 = scmp.ne.s32.totalorder %s1260_s18, 1 }
  0x6d   : > { %875 = vmatmul.msk.bf16.vlgmr.msra.gmra.mxu0 %vm322_vm1, %v309_v4 }
  0xea   : > { %v335_v6 = vpop.f32.mrf.mxu0 }
  0xeb   : > { %v339_v7 = vadd.f32 %v335_v6, %v307_v5  ;;  %v475_v6 = vld [vmem:[%s474_s4] sm:$0x3] }
  0xed   : > { %1026 = vtanh.f32 %v339_v7  ;;  %v876_v11 = vmul.f32 -1.442695, %v339_v7 }
  0xef   : > { %1028 = vpow2.f32 %v876_v11 }
  0xf2   : > { %v337_v8 = vpop.f32.mrf.mxu0 }
  0xf3   : > { %v1027_v9 = vpop.eup %1026 }
  0xf4   : > { %367 = vrot.lane.b32.xlu0 %v1027_v9, %s1283_s24 }
  0xf5   : > { %v1029_v12 = vpop.eup %1028 }
  0xf6   : > { %v343_v13 = vadd.f32 1.0, %v1029_v12 }
  0xf8   : > { %1030 = vrcp.f32 %v343_v13  ;;  %v355_v19 = vand.u32 2147483648, %v343_v13  ;;  %vm349_vm3 = vweird.f32 %v343_v13  ;;  %v353_v20 = vand.u32 2147483647, %v343_v13 }
  0xfa   : > { %v356_v22 = vor.u32 1.1754944e-38, %v355_v19  ;;  %vm354_vm5 = vcmp.eq.f32.partialorder %v353_v20, 8.507059e+37 }
  0xfc   : > { %362 = vrot.lane.b32.xlu0 %v360_v10, %s1721_s10 }
  0xfe   : > { %v1031_v14 = vpop.eup %1030 }
  0xff   : > { %v345_v15 = vmul.f32 %v1031_v14, %v343_v13  ;;  %vm350_vm2 = vweird.f32 %v1031_v14 }
 0x100   : > { %vm351_vm4 = vmor %vm349_vm3, %vm350_vm2 }
 0x101   : > { %v346_v16 = vsub.f32 1.0, %v345_v15 }
 0x103   : > { %v347_v17 = vmul.f32 %v1031_v14, %v346_v16 }
 0x105   : > { %v348_v18 = vadd.f32 %v1031_v14, %v347_v17 }
 0x107   : > { %v352_v21 = vsel %vm351_vm4, %v1031_v14, %v348_v18 }
 0x108   : > { %v357_v24 = vsel %vm354_vm5, %v356_v22, %v352_v21 }
 0x166   : > { %v368_v23 = vpop.permute.xlu0 %367 }
 0x167   : > { %v370_v25 = vmul.f32 %v368_v23, %v357_v24 }
 0x169   : > { %372 = vrot.lane.b32.xlu1 %v370_v25, %s1721_s10 }
 0x16e   : > { %v363_v26 = vpop.permute.xlu0 %362 }
 0x16f   : > { %v365_v27 = vmul.f32 %v363_v26, %v357_v24 }
 0x1db   : > { %v373_v28 = vpop.permute.xlu1 %372 }
 0x1dc   : > { %v375_v29 = vadd.f32 %v373_v28, %v365_v27 }
 0x1de   : > { %1032 = vtanh.f32 %v375_v29 }
 0x1e4   : > { %v1033_v30 = vpop.eup %1032 }
 0x1e5   : > { %378 = vrot.lane.b32.xlu1 %v1033_v30, %s1283_s24 }
 0x257   : > { %v379_v31 = vpop.permute.xlu1 %378 }
 0x258   : > { %v381_v32 = vmul.f32 %v379_v31, %v357_v24 }
 0x25a   : > { %389 = vrot.lane.b32.xlu2 %v381_v32, %s1721_s10 }
 0x262   : > { %383 = vrot.lane.b32.xlu2 %v375_v29, %s1285_s5 }
 0x2b4   : > { %v390_v33 = vpop.permute.xlu2 %389 }
 0x2b5   : > { %392 = vst.msk [vmem:[#allocation2] sm:$0x3] %vm386_vm6, %v390_v33 }
 0x2b6   : > { %394 = vst.msk [vmem:[%s393_s20] sm:$0x3] %vm386_vm6, %v390_v33  ;;  %s765_s20 = scalar_lea.vmem %s1525_s7, %s886_s15 [#allocation4]  ;;  %s769_s7 = scalar_lea.vmem %s1541_s30, %s886_s15 [#allocation9] }
 0x2bc   : > { %v384_v34 = vpop.permute.xlu2 %383  ;;  %v399_v35 = vld [vmem:[#allocation2] sm:$0x3] }
 0x2bd   : > { %387 = vst.msk [vmem:[#allocation3] sm:$0x3] %vm386_vm6, %v384_v34  ;;  %v400_v36 = vpack.c.bf16 %v399_v35, %v399_v35 }
 0x2bf   : > { %879 = vmatmul.msk.bf16.vlgmr.msra.gmra.mxu1 %vm322_vm1, %v400_v36 }
 0x2c4   : > { %v438_v37 = vld [vmem:[#allocation3] sm:$0x3] }
 0x2c5   : > { %440 = vrot.lane.b32.xlu1 %v438_v37, %s1721_s10 }
 0x337   : > { %v441_v58 = vpop.permute.xlu1 %440 }
 0x33c   : > { %v413_v39 = vpop.f32.mrf.mxu1 }
 0x33d   : > { %v417_v40 = vadd.f32 %v878_v38, %v413_v39  ;;  %v887_v38 = vld [vmem:[%s765_s20 + $0x6] sm:$0x3] }
 0x33f   : > { %1034 = vtanh.f32 %v417_v40  ;;  %v880_v43 = vmul.f32 -1.442695, %v417_v40 }
 0x341   : > { %1036 = vpow2.f32 %v880_v43 }
 0x344   : > { %v415_v41 = vpop.f32.mrf.mxu1 }
 0x345   : > { %v1035_v42 = vpop.eup %1034 }
 0x346   : > { %445 = vrot.lane.b32.xlu0 %v1035_v42, %s1283_s24 }
 0x347   : > { %v1037_v44 = vpop.eup %1036 }
 0x348   : > { %v421_v45 = vadd.f32 1.0, %v1037_v44 }
 0x34a   : > { %1038 = vrcp.f32 %v421_v45  ;;  %v433_v51 = vand.u32 2147483648, %v421_v45  ;;  %vm427_vm8 = vweird.f32 %v421_v45  ;;  %v431_v52 = vand.u32 2147483647, %v421_v45 }
 0x34c   : > { %v434_v54 = vor.u32 1.1754944e-38, %v433_v51  ;;  %vm432_vm10 = vcmp.eq.f32.partialorder %v431_v52, 8.507059e+37 }
 0x350   : > { %v1039_v46 = vpop.eup %1038 }
 0x351   : > { %v423_v47 = vmul.f32 %v1039_v46, %v421_v45  ;;  %vm428_vm7 = vweird.f32 %v1039_v46 }
 0x352   : > { %vm429_vm9 = vmor %vm427_vm8, %vm428_vm7 }
 0x353   : > { %v424_v48 = vsub.f32 1.0, %v423_v47 }
 0x355   : > { %v425_v49 = vmul.f32 %v1039_v46, %v424_v48 }
 0x357   : > { %v426_v50 = vadd.f32 %v1039_v46, %v425_v49 }
 0x359   : > { %v430_v53 = vsel %vm429_vm9, %v1039_v46, %v426_v50 }
 0x35a   : > { %v435_v56 = vsel %vm432_vm10, %v434_v54, %v430_v53 }
 0x35b   : > { %v443_v59 = vmul.f32 %v441_v58, %v435_v56 }
 0x3b8   : > { %v446_v55 = vpop.permute.xlu0 %445 }
 0x3b9   : > { %v448_v57 = vmul.f32 %v446_v55, %v435_v56 }
 0x3bb   : > { %450 = vrot.lane.b32.xlu2 %v448_v57, %s1721_s10 }
 0x415   : > { %v451_v60 = vpop.permute.xlu2 %450 }
 0x416   : > { %v453_v61 = vadd.f32 %v451_v60, %v443_v59 }
 0x418   : > { %1040 = vtanh.f32 %v453_v61  ;;  %461 = vrot.lane.b32.xlu2 %v453_v61, %s1285_s5 }
 0x41e   : > { %v1041_v62 = vpop.eup %1040 }
 0x41f   : > { %456 = vrot.lane.b32.xlu0 %v1041_v62, %s1283_s24 }
 0x472   : > { %v462_v63 = vpop.permute.xlu2 %461 }
 0x473   : > { %464 = vst.msk [vmem:[#allocation3] sm:$0x3] %vm386_vm6, %v462_v63 }
 0x47a   : > { %v515_v2 = vld [vmem:[#allocation3] sm:$0x3] }
 0x491   : > { %v457_v0 = vpop.permute.xlu0 %456 }
 0x492   : > { %v459_v1 = vmul.f32 %v457_v0, %v435_v56 }
 0x494   : > { %466 = vrot.lane.b32.xlu1 %v459_v1, %s1721_s10 }
 0x49c   : > { %517 = vrot.lane.b32.xlu1 %v515_v2, %s1721_s10 }
 0x506   : > { %v467_v3 = vpop.permute.xlu1 %466 }
 0x507   : > { %469 = vst.msk [vmem:[#allocation2] sm:$0x3] %vm386_vm6, %v467_v3 }
 0x508   : > { %882 = vst.msk [vmem:[%s757_s29 + $0x2] sm:$0x3] %vm386_vm6, %v467_v3 }
 0x50e   : > { %v476_v4 = vld [vmem:[#allocation2] sm:$0x3]  ;;  %v518_v26 = vpop.permute.xlu1 %517 }
 0x50f   : > { %v477_v5 = vpack.c.bf16 %v476_v4, %v476_v4 }
 0x511   : > { %884 = vmatmul.msk.bf16.vlgmr.msra.gmra.mxu2 %vm322_vm1, %v477_v5 }
 0x594   : > { %v490_v7 = vpop.f32.mrf.mxu2 }
 0x595   : > { %v494_v8 = vadd.f32 %v490_v7, %v475_v6 }
 0x597   : > { %1042 = vtanh.f32 %v494_v8  ;;  %v885_v11 = vmul.f32 -1.442695, %v494_v8 }
 0x599   : > { %1044 = vpow2.f32 %v885_v11 }
 0x59c   : > { %v492_v9 = vpop.f32.mrf.mxu2 }
 0x59d   : > { %v1043_v10 = vpop.eup %1042 }
 0x59e   : > { %522 = vrot.lane.b32.xlu0 %v1043_v10, %s1283_s24 }
 0x59f   : > { %v1045_v12 = vpop.eup %1044 }
 0x5a0   : > { %v498_v13 = vadd.f32 1.0, %v1045_v12 }
 0x5a2   : > { %1046 = vrcp.f32 %v498_v13  ;;  %v510_v19 = vand.u32 2147483648, %v498_v13  ;;  %vm504_vm12 = vweird.f32 %v498_v13  ;;  %v508_v20 = vand.u32 2147483647, %v498_v13 }
 0x5a4   : > { %v511_v22 = vor.u32 1.1754944e-38, %v510_v19  ;;  %vm509_vm14 = vcmp.eq.f32.partialorder %v508_v20, 8.507059e+37 }
 0x5a8   : > { %v1047_v14 = vpop.eup %1046 }
 0x5a9   : > { %v500_v15 = vmul.f32 %v1047_v14, %v498_v13  ;;  %vm505_vm11 = vweird.f32 %v1047_v14 }
 0x5aa   : > { %vm506_vm13 = vmor %vm504_vm12, %vm505_vm11 }
 0x5ab   : > { %v501_v16 = vsub.f32 1.0, %v500_v15 }
 0x5ad   : > { %v502_v17 = vmul.f32 %v1047_v14, %v501_v16 }
 0x5af   : > { %v503_v18 = vadd.f32 %v1047_v14, %v502_v17 }
 0x5b1   : > { %v507_v21 = vsel %vm506_vm13, %v1047_v14, %v503_v18 }
 0x5b2   : > { %v512_v24 = vsel %vm509_vm14, %v511_v22, %v507_v21 }
 0x5b3   : > { %v520_v27 = vmul.f32 %v518_v26, %v512_v24 }
 0x610   : > { %v523_v23 = vpop.permute.xlu0 %522 }
 0x611   : > { %v525_v25 = vmul.f32 %v523_v23, %v512_v24 }
 0x613   : > { %527 = vrot.lane.b32.xlu2 %v525_v25, %s1721_s10 }
 0x66d   : > { %v528_v28 = vpop.permute.xlu2 %527 }
 0x66e   : > { %v530_v29 = vadd.f32 %v528_v28, %v520_v27 }
 0x670   : > { %1048 = vtanh.f32 %v530_v29  ;;  %538 = vrot.lane.b32.xlu2 %v530_v29, %s1285_s5 }
 0x676   : > { %v1049_v30 = vpop.eup %1048 }
 0x677   : > { %533 = vrot.lane.b32.xlu0 %v1049_v30, %s1283_s24 }
 0x6ca   : > { %v539_v31 = vpop.permute.xlu2 %538 }
 0x6cb   : > { %541 = vst.msk [vmem:[#allocation3] sm:$0x3] %vm386_vm6, %v539_v31 }
 0x6d2   : > { %v593_v34 = vld [vmem:[#allocation3] sm:$0x3] }
 0x6e9   : > { %v534_v32 = vpop.permute.xlu0 %533 }
 0x6ea   : > { %v536_v33 = vmul.f32 %v534_v32, %v512_v24 }
 0x6ec   : > { %543 = vrot.lane.b32.xlu1 %v536_v33, %s1721_s10 }
 0x6f4   : > { %595 = vrot.lane.b32.xlu1 %v593_v34, %s1721_s10 }
 0x75e   : > { %v544_v35 = vpop.permute.xlu1 %543 }
 0x75f   : > { %546 = vst.msk [vmem:[#allocation2] sm:$0x3] %vm386_vm6, %v544_v35 }
 0x760   : > { %548 = vst.msk [vmem:[%s547_s6] sm:$0x3] %vm386_vm6, %v544_v35 }
 0x766   : > { %v554_v36 = vld [vmem:[#allocation2] sm:$0x3]  ;;  %v596_v58 = vpop.permute.xlu1 %595 }
 0x767   : > { %v555_v37 = vpack.c.bf16 %v554_v36, %v554_v36 }
 0x769   : > { %888 = vmatmul.msk.bf16.vlgmr.msra.gmra.mxu3 %vm322_vm1, %v555_v37 }
 0x7ec   : > { %v568_v39 = vpop.f32.mrf.mxu3 }
 0x7ed   : > { %v572_v40 = vadd.f32 %v887_v38, %v568_v39 }
 0x7ef   : > { %1050 = vtanh.f32 %v572_v40  ;;  %v889_v43 = vmul.f32 -1.442695, %v572_v40 }
 0x7f1   : > { %1052 = vpow2.f32 %v889_v43 }
 0x7f4   : > { %v570_v41 = vpop.f32.mrf.mxu3 }
 0x7f5   : > { %v1051_v42 = vpop.eup %1050 }
 0x7f6   : > { %600 = vrot.lane.b32.xlu0 %v1051_v42, %s1283_s24 }
 0x7f7   : > { %v1053_v44 = vpop.eup %1052 }
 0x7f8   : > { %v576_v45 = vadd.f32 1.0, %v1053_v44 }
 0x7fa   : > { %1054 = vrcp.f32 %v576_v45  ;;  %v588_v51 = vand.u32 2147483648, %v576_v45  ;;  %vm582_vm0 = vweird.f32 %v576_v45  ;;  %v586_v52 = vand.u32 2147483647, %v576_v45 }
 0x7fc   : > { %v589_v54 = vor.u32 1.1754944e-38, %v588_v51  ;;  %vm587_vm2 = vcmp.eq.f32.partialorder %v586_v52, 8.507059e+37 }
 0x800   : > { %v1055_v46 = vpop.eup %1054 }
 0x801   : > { %v578_v47 = vmul.f32 %v1055_v46, %v576_v45  ;;  %vm583_vm15 = vweird.f32 %v1055_v46 }
 0x802   : > { %vm584_vm1 = vmor %vm582_vm0, %vm583_vm15 }
 0x803   : > { %v579_v48 = vsub.f32 1.0, %v578_v47 }
 0x805   : > { %v580_v49 = vmul.f32 %v1055_v46, %v579_v48 }
 0x807   : > { %v581_v50 = vadd.f32 %v1055_v46, %v580_v49 }
 0x809   : > { %v585_v53 = vsel %vm584_vm1, %v1055_v46, %v581_v50 }
 0x80a   : > { %v590_v56 = vsel %vm587_vm2, %v589_v54, %v585_v53 }
 0x80b   : > { %v598_v59 = vmul.f32 %v596_v58, %v590_v56 }
 0x868   : > { %v601_v55 = vpop.permute.xlu0 %600 }
 0x869   : > { %v603_v57 = vmul.f32 %v601_v55, %v590_v56 }
 0x86b   : > { %605 = vrot.lane.b32.xlu2 %v603_v57, %s1721_s10 }
 0x8c5   : > { %v606_v60 = vpop.permute.xlu2 %605 }
 0x8c6   : > { %v608_v61 = vadd.f32 %v606_v60, %v598_v59 }
 0x8c8   : > { %1056 = vtanh.f32 %v608_v61  ;;  %616 = vrot.lane.b32.xlu1 %v608_v61, %s1285_s5 }
 0x8ce   : > { %v1057_v62 = vpop.eup %1056 }
 0x8cf   : > { %611 = vrot.lane.b32.xlu0 %v1057_v62, %s1283_s24 }
 0x93a   : > { %v617_v63 = vpop.permute.xlu1 %616 }
 0x93b   : > { %619 = vst.msk [vmem:[#allocation3] sm:$0x3] %vm386_vm6, %v617_v63 }
 0x941   : > { %v612_v0 = vpop.permute.xlu0 %611 }
 0x942   : > { %v614_v1 = vmul.f32 %v612_v0, %v590_v56 }
 0x944   : > { %621 = vrot.lane.b32.xlu2 %v614_v1, %s1721_s10 }
 0x99c   : > { %630 = sbr.rel (%p892_p11) target bundleno = 2467 (0x9a3), region = 44 }
 0x99e   : > { %v622_v2 = vpop.permute.xlu2 %621 }
 0x99f   : > { %624 = vst.msk [vmem:[#allocation2] sm:$0x3] %vm386_vm6, %v622_v2 }
 0x9a0   : > { %891 = vst.msk [vmem:[%s769_s7 + $0x6] sm:$0x3] %vm386_vm6, %v622_v2 }
 0x9a1   : > { %v631_v3 = vld [vmem:[#allocation3] sm:$0x3] }
 0x9a2   : > { %632 = vst.msk [vmem:[%s1543_s28] sm:$0x3] %vm386_vm6, %v631_v3 }
 0x9a3 PF: > { %s895_s24 = sshll.u32 %s1260_s18, 1  ;;  %s897_s9 = sshll.u32 %s1264_s19, 3 }
 0x9a4   : > { %s647_s5 = ssub.s32 1, %s895_s24  ;;  %s657_s23 = sshll.u32 %s1541_s30, 4  ;;  %s1621_s23 = int_to_ptr.vmem [resolvable:$true] %s657_s23 }
 0x9a5   : > { %s648_s29 = smul.u32 %s1264_s19, %s647_s5  ;;  %s672_s7 = scalar_lea.hbm %s1710_s3, %s1566_s26 }
 0x9a6   : > { %s674_s1 = sshll.u32 %s1543_s28, 4  ;;  %s1761_s16 = sld [smem:[#allocation30_spill]]  ;;  %s1629_s1 = int_to_ptr.vmem [resolvable:$true] %s674_s1 }
 0x9a7   : > { %s649_s11 = sadd.s32 %s1260_s18, %s648_s29  ;;  %s1634_s19 = sshll.u32 %s672_s7, 4  ;;  %s677_s19 = int_to_ptr.hbm [resolvable:$true] %s1634_s19 }
 0x9a8   : > { %s896_s4 = sshll.u32 %s649_s11, 2  ;;  %s634_s18 = scalar_lea.sflag [#allocation6], %s1521_s0 }
 0x9a9   : > { %s654_s10 = sadd.s32 %s897_s9, %s896_s4 }
 0x9aa   : > { %s898_s21 = sshll.u32 %s654_s10, 1 }
 0x9ac   : > { %s1762_s27 = smov %s1761_s16  ;;  %s656_s14 = scalar_lea.hbm %s1761_s16, %s898_s21 }
 0x9ad   : > { %s659_s30 = sshll.u32 %s656_s14, 4  ;;  %s1138_s26 = scalar_lea.hbm %s1762_s27, 32  ;;  %s660_s30 = int_to_ptr.hbm [resolvable:$true] %s659_s30 }
 0x9ae   : > { %s1132_s5 = sshra.s32 %s660_s30, 4  ;;  %s1133_s5 = int_to_ptr.hbm [resolvable:$true] %s1132_s5 }
 0x9af   : > { %s1134_s29 = scalar_lea.hbm %s1133_s5, 8  ;;  %p1139_p4 = scmp.lt.s32.totalorder %s1133_s5, %s1762_s27 }
 0x9b0   : > { %p1135_p13 = scmp.ne.s32.totalorder %s1133_s5, %s1134_s29  ;;  %p1140_p10 = scmp.lt.s32.totalorder %s1138_s26, %s1134_s29 }
 0x9b2   : > { %p1136_p0 = pnand %p1135_p13, %p1424_p12  ;;  %p1141_p5 = por %p1140_p10, %p1139_p4 }
 0x9b4   : > { %p1137_p2 = pneg %p1136_p0 }
 0x9b6   : > { %p1142_p3 = pnand %p1141_p5, %p1137_p2 }
 0x9b8   : > { %1145 = shalt.err (!%p1142_p3)
}
 0x9b9   : > { %s1286_s0 = smov 2   ;;  %s1763_s14 = smov 32  }
 0x9ba   : > { %909 = dma.vmem_to_hbm [thread:$0]  (%p1424_p12), %s1621_s23, 128, %s660_s30, %s634_s18, %s1763_s14, %s1763_s14, %s1286_s0  }
 0x9bb   : > { %s639_s21 = scalar_lea.sflag [#allocation11], %s1532_s25  ;;  %s1160_s9 = sshra.s32 %s677_s19, 4  ;;  %s1161_s9 = int_to_ptr.hbm [resolvable:$true] %s1160_s9 }
 0x9bc   : > { %s1162_s11 = scalar_lea.hbm %s1161_s9, 2  ;;  %s1166_s15 = scalar_lea.hbm %s1710_s3, 4 }
 0x9bd   : > { %p1163_p6 = scmp.ne.s32.totalorder %s1161_s9, %s1162_s11  ;;  %p1167_p11 = scmp.lt.s32.totalorder %s1161_s9, %s1710_s3 }
 0x9be   : > { %p1168_p13 = scmp.lt.s32.totalorder %s1166_s15, %s1162_s11 }
 0x9bf   : > { %p1164_p9 = pnand %p1163_p6, %p1493_p1 }
 0x9c0   : > { %p1169_p0 = por %p1168_p13, %p1167_p11 }
 0x9c1   : > { %p1165_p8 = pneg %p1164_p9 }
 0x9c3   : > { %p1170_p12 = pnand %p1169_p0, %p1165_p8 }
 0x9c5   : > { %1173 = shalt.err (!%p1170_p12)
}
 0x9c6   : > { %910 = dma.vmem_to_hbm [thread:$0]  (%p1493_p1), %s1629_s1, 32, %s677_s19, %s639_s21  }
 0x9c7 PF: > { %s1764_s25 = sld [smem:[#allocation17_spill]]  ;;  %p928_p2 = scmp.ge.s32.totalorder %s1276_s22, 2 }
 0x9c8   : > { %s1765_s23 = sld [smem:[#allocation26_spill]] }
 0x9cd   : > { %s688_s24 = sand.u32 1, %s1764_s25  }
 0x9ce   : > { %p1766_p4 = scmp.ne.s32.totalorder %s1765_s23, 0  ;;  %s689_s30 = scalar_lea.sflag [#allocation6], %s688_s24 }
 0x9d0   : > { %p921_p10 = pnand %p928_p2, %p1766_p4 }
 0x9d2   : > { %p922_p5 = pneg %p921_p10 }
 0x9d4   : > { %1227 = dma.done.wait (%p922_p5), %s689_s30, 128  }
 0x9d5   : > { %1229 = vsyncadd (%p922_p5), %s689_s30, 4294967168  ;;  %s698_s18 = sand.u32 1, %s1236_s12   ;;  %p924_p3 = pnand %p928_p2, %p1506_p7 }
 0x9d6   : > { %s699_s2 = scalar_lea.sflag [#allocation11], %s698_s18 }
 0x9d7   : > { %p925_p6 = pneg %p924_p3 }
 0x9d9   : > { %1231 = dma.done.wait (%p925_p6), %s699_s2, 32  }
 0x9da   : > { %1233 = vsyncadd (%p925_p6), %s699_s2, 4294967264  ;;  %s26_s22 = sadd.s32 1, %s1276_s22   ;;  %s1767_s1 = sld [smem:[#allocation16_spill]] }
 0x9db   : > { %p23_p1 = scmp.ge.s32.totalorder %s26_s22, 6   ;;  %s1768_s14 = sld [smem:[#allocation27_spill]] }
 0x9dc   : > { %s1769_s15 = sld [smem:[#allocation18_spill]]  ;;  %s1776_s12 = smov %s1240_s13 }
 0x9dd   : > { %s1770_s16 = sld [smem:[#allocation19_spill]] }
 0x9de   : > { %s1771_s17 = sld [smem:[#allocation25_spill]]  ;;  %25 = sbr.rel (!%p23_p1) target bundleno = 17 (0x11), region = 119 }
 0x9df   : > { %s1772_s18 = sld [smem:[#allocation20_spill]] }
 0x9e0   : > { %s1773_s19 = sld [smem:[#allocation21_spill]]  ;;  %s1777_s13 = smov %s1767_s1 }
 0x9e1   : > { %s1774_s20 = sld [smem:[#allocation22_spill]] }
 0x9e2   : > { %s1775_s21 = sld [smem:[#allocation23_spill]] }
 0x9e3   :  { %705 = vsyncpa [#allocation5], 1 }
 0x9e4   :  { %707 = vsyncpa [#allocation5 + $0x1], 1 }
 0x9e5   :  { %708 = vsyncpa [#allocation8], 1 }
 0x9e6   :  { %710 = vsyncpa [#allocation8 + $0x1], 1 }
 0x9e7   :  { %711 = vsyncpa [#allocation6], 1 }
 0x9e8   :  { %713 = vsyncpa [#allocation6 + $0x1], 1 }
 0x9e9   :  { %714 = vsyncpa [#allocation11], 1 }
 0x9ea   :  { %716 = vsyncpa [#allocation11 + $0x1], 1 }

</bundles_post_ra>
